<compile_context>
chip_gen: v5e
topology: v5e:2x2
jax: 0.10.0
libtpu: 0.0.40
codegen_flags: <defaults>
</compile_context>

<pallas_src>
import jax
import jax.numpy as jnp
from jax import lax
from jax.experimental import pallas as pl
from jax.experimental.pallas import tpu as pltpu


def _concat_downsample_kernel(sel_ref, x_ref, o_ref):
    # sel_ref: (s, s*chunk, chunk)  0/1 banded column-selection blocks (resident)
    # x_ref:   (c_blk, h_blk, W)    channel/row-blocked input slab
    # o_ref:   (c_blk, s, s, h_blk/s, Wo)  its space-to-depth rearrangement
    c_blk, _, _ = x_ref.shape
    _, s, _, ho, wo = o_ref.shape
    _, k_cols, chunk = sel_ref.shape            # k_cols == s * chunk
    n_chunks = wo // chunk

    compute_dtype = sel_ref.dtype               # bf16 stays native (exact), else f32
    # 0/1 weights: exact in native bf16; exact for f32 under HIGHEST multi-pass.
    prec = None if compute_dtype == jnp.bfloat16 else lax.Precision.HIGHEST

    for kh in range(s):                                     # static unroll, s tiny
        for j in range(n_chunks):                           # 128-lane output chunks
            # Sublane-strided pick of rows kh, kh+s, ... restricted to the
            # s*chunk input columns feeding output columns [j*chunk, (j+1)*chunk).
            lhs = x_ref[:, pl.ds(kh, ho, s), pl.ds(j * k_cols, k_cols)]
            lhs = lhs.astype(compute_dtype).reshape(c_blk * ho, k_cols)
            for kw in range(s):                             # static unroll
                g = jnp.dot(lhs, sel_ref[kw], precision=prec,
                            preferred_element_type=jnp.float32)
                o_ref[:, kh, kw, :, pl.ds(j * chunk, chunk)] = (
                    g.reshape(c_blk, ho, chunk).astype(o_ref.dtype))


def _pad_to(n, m):
    return -(-n // m) * m


def _reference(x, s):
    # Pure-JAX reference of F.unfold(x, s, stride=s).view(b, c*s*s, h//s, w//s)
    b, c, h, w = x.shape
    r = x.reshape(b, c, h // s, s, w // s, s)
    r = jnp.transpose(r, (0, 1, 3, 5, 2, 4))
    return r.reshape(b, c * s * s, h // s, w // s)


def concat_downsample2d(x, scale_factor):
    b, c, h, w = x.shape
    s = int(scale_factor)
    if s < 1:
        raise ValueError("scale_factor must be a positive integer")
    if (h % s != 0) or (w % s != 0):
        raise ValueError("spatial size of input tensor must be a multiple of scale_factor")
    ho, wo = h // s, w // s

    if not jnp.issubdtype(x.dtype, jnp.floating):
        # TODO(synk): integer inputs need a non-MXU copy path (v7x MXU has no int
        # support); serve them with the exact pure-XLA rearrangement instead.
        return _reference(x, s)

    itemsize = jnp.dtype(x.dtype).itemsize
    sub = 8 * max(1, 4 // itemsize)              # sublane granularity (8 f32, 16 bf16)

    # ---- Banded column-selection blocks (built once, resident across the grid).
    # TODO(synk): when Wo is not a multiple of 128 we fall back to one full-width
    #             (W, Wo) selection block; the kernel is HBM-bound there anyway.
    chunk = 128 if wo % 128 == 0 else wo
    k_cols = s * chunk
    compute_dtype = jnp.bfloat16 if x.dtype == jnp.bfloat16 else jnp.float32
    rr = jnp.arange(k_cols, dtype=jnp.int32)[None, :, None]
    cc = jnp.arange(chunk, dtype=jnp.int32)[None, None, :]
    kk = jnp.arange(s, dtype=jnp.int32)[:, None, None]
    sel = (rr == cc * s + kk).astype(compute_dtype)          # (s, s*chunk, chunk)

    # ---- VMEM budgeting from the actual chip, using PADDED block footprints.
    try:
        vmem_cap = int(pltpu.get_tpu_info().vmem_capacity_bytes)
    except Exception:
        vmem_cap = 64 << 20                       # assume smallest (v7x per-core)
    vmem_limit = max(32 << 20, min(vmem_cap - (16 << 20), 100 << 20))
    budget = vmem_limit - (4 << 20)               # sel block + misc headroom

    def in_bytes(cb, hb):                         # padded input block footprint
        return cb * _pad_to(hb, sub) * _pad_to(w, 128) * itemsize

    def out_bytes(cb, hb):                        # padded output block footprint
        return cb * s * s * _pad_to(hb // s, sub) * _pad_to(wo, 128) * itemsize

    def fits(cb, hb):
        # 2x double-buffered in+out, plus ~1 block of matmul staging / headroom.
        return 3 * (in_bytes(cb, hb) + out_bytes(cb, hb)) <= budget

    # H-block candidates: divisors of H keeping both h_blk and h_blk/s second-to-
    # last block dims (8,128)-legal (or full).  Largest first.
    h_cands = [h] + [h // n for n in range(2, h + 1)
                     if h % n == 0 and (h // n) % (s * sub) == 0]
    c_divs = [d for d in range(c, 0, -1) if c % d == 0]

    c_blk, h_blk = 1, h_cands[-1]                 # best-effort fallback
    for hb in h_cands:
        cb = next((d for d in c_divs if fits(d, hb)), None)
        if cb is not None:
            c_blk, h_blk = cb, hb
            break

    # Megacore: if everything landed in a single grid step, split H instead of
    # shrinking the channel block (keeps per-step DMAs multi-MiB on v7x).
    if b * (c // c_blk) * (h // h_blk) < 2 and len(h_cands) > 1:
        h_blk = h_cands[1]

    ho_blk = h_blk // s
    grid = (b, c // c_blk, h // h_blk)

    out6 = pl.pallas_call(
        _concat_downsample_kernel,
        out_shape=jax.ShapeDtypeStruct((b, c, s, s, ho, wo), x.dtype),
        grid=grid,
        in_specs=[
            pl.BlockSpec((s, k_cols, chunk), lambda i, j, k: (0, 0, 0)),
            pl.BlockSpec((None, c_blk, h_blk, w), lambda i, j, k: (i, j, k, 0)),
        ],
        out_specs=pl.BlockSpec(
            (None, c_blk, s, s, ho_blk, wo), lambda i, j, k: (i, j, 0, 0, k, 0)
        ),
        compiler_params=pltpu.CompilerParams(
            dimension_semantics=("parallel", "parallel", "parallel"),
            vmem_limit_bytes=vmem_limit,
        ),
        cost_estimate=pl.CostEstimate(
            flops=2 * b * c * h * w * s * chunk,   # banded 0/1 MXU gather
            transcendentals=0,
            bytes_accessed=2 * b * c * h * w * itemsize,
        ),
    )(sel, x)

    # Merge (C, s, s) -> C*s*s: adjacent leading axes, minor (Ho, Wo) layout
    # untouched -> metadata-only reshape, exactly the unfold channel ordering
    # c*(s*s) + kh*s + kw.
    # TODO(synk): for late-stage maps with Wo < 128 the kernel's stores are
    #             lane-masked; those shapes are better fused into the consumer
    #             or served by the pure-XLA path.
    return out6.reshape(b, c * s * s, ho, wo)


class ConcatDownsample2d:
    """Pallas equivalent of holocron's ConcatDownsample2d (no parameters)."""

    def __init__(self, scale_factor):
        self.scale_factor = scale_factor

    def __call__(self, x):
        return concat_downsample2d(x, self.scale_factor)


if __name__ == "__main__":
    key = jax.random.PRNGKey(0)

    # 1) small NCHW float32, scale_factor=2 (matches the module's typical use)
    x = jax.random.normal(key, (2, 4, 16, 16), dtype=jnp.float32)
    module = ConcatDownsample2d(scale_factor=2)
    out = jax.block_until_ready(module(x))
    assert out.shape == (2, 4 * 2 * 2, 8, 8), out.shape
    assert jnp.allclose(out, _reference(x, 2), rtol=1e-6, atol=1e-6), "mismatch vs reference"

    # 2) exactness: full 24-bit mantissas must survive the 0/1 MXU gather bit-for-bit
    xi = jax.random.randint(jax.random.PRNGKey(1), (1, 3, 8, 8), 0, 1 << 24).astype(jnp.float32)
    out_i = jax.block_until_ready(concat_downsample2d(xi, 2))
    assert jnp.array_equal(out_i, _reference(xi, 2)), "fp32 gather not exact"

    # 3) banded path (Wo multiple of 128 -> 128-lane chunks) and native-bf16 path
    xw = jax.random.normal(jax.random.PRNGKey(2), (1, 2, 8, 512), dtype=jnp.float32)
    out_w = jax.block_until_ready(concat_downsample2d(xw, 2))
    assert jnp.allclose(out_w, _reference(xw, 2), rtol=1e-6, atol=1e-6), "banded path mismatch"

    xb = x.astype(jnp.bfloat16)
    out_b = jax.block_until_ready(concat_downsample2d(xb, 2))
    assert jnp.array_equal(out_b, _reference(xb, 2)), "bf16 path not exact"

    print("KERNEL_OK")
</pallas_src>

<mosaic_0001>
module attributes {stable_mosaic.version = 11 : i64} {
  func.func @_concat_downsample_kernel(%arg0: i32, %arg1: i32, %arg2: i32, %arg3: memref<2x16x8xf32, #tpu.memory_space<vmem>>, %arg4: memref<1x4x16x16xf32, #tpu.memory_space<vmem>>, %arg5: memref<1x4x2x2x8x8xf32, #tpu.memory_space<vmem>>) attributes {dimension_semantics = [#tpu.dimension_semantics<parallel>, #tpu.dimension_semantics<parallel>, #tpu.dimension_semantics<parallel>], iteration_bounds = array<i64: 2, 1, 1>, scalar_prefetch = 0 : i64, scratch_operands = 0 : i64, tpu.core_type = #tpu.core_type<tc>, window_params = [{pipeline_mode = #tpu.pipeline_mode<synchronous>, transform_indices = @transform_0, window_bounds = array<i64: 2, 16, 8>}, {transform_indices = @transform_1, window_bounds = array<i64: 1, 4, 16, 16>}, {transform_indices = @transform_2, window_bounds = array<i64: 1, 4, 2, 2, 8, 8>}]} {
    %c0 = arith.constant 0 : index
    %c0_0 = arith.constant 0 : index
    %c0_1 = arith.constant 0 : index
    %c0_2 = arith.constant 0 : index
    %0 = tpu.strided_load %arg4[%c0, %c0_0, %c0_1, %c0_2] {strides = array<i32: 1, 1, 2, 1>} : memref<1x4x16x16xf32, #tpu.memory_space<vmem>>, vector<1x4x8x16xf32>
    %1 = vector.shape_cast %0 : vector<1x4x8x16xf32> to vector<4x8x16xf32>
    %2 = vector.shape_cast %1 : vector<4x8x16xf32> to vector<32x16xf32>
    %c0_3 = arith.constant 0 : index
    %c0_4 = arith.constant 0 : index
    %c0_5 = arith.constant 0 : index
    %3 = vector.load %arg3[%c0_3, %c0_4, %c0_5] : memref<2x16x8xf32, #tpu.memory_space<vmem>>, vector<1x16x8xf32>
    %4 = vector.shape_cast %3 : vector<1x16x8xf32> to vector<16x8xf32>
    %cst = arith.constant dense<0.000000e+00> : vector<32x8xf32>
    %5 = tpu.matmul %2, %4, %cst {dimension_numbers = #tpu.dot_dimension_numbers<[1], [0], [0], [1], [0, 0, 1, 1], [], []>, precision = #tpu.contract_precision<fp32>} : vector<32x16xf32>, vector<16x8xf32>, vector<32x8xf32> -> vector<32x8xf32>
    %6 = vector.shape_cast %5 : vector<32x8xf32> to vector<4x8x8xf32>
    %c0_6 = arith.constant 0 : index
    %c0_7 = arith.constant 0 : index
    %c0_8 = arith.constant 0 : index
    %c0_9 = arith.constant 0 : index
    %c0_10 = arith.constant 0 : index
    %c0_11 = arith.constant 0 : index
    %7 = vector.load %arg5[%c0_6, %c0_7, %c0_8, %c0_9, %c0_10, %c0_11] : memref<1x4x2x2x8x8xf32, #tpu.memory_space<vmem>>, vector<1x4x1x1x8x8xf32>
    %8 = vector.shape_cast %7 : vector<1x4x1x1x8x8xf32> to vector<4x8x8xf32>
    %9 = vector.shape_cast %6 : vector<4x8x8xf32> to vector<1x4x1x1x8x8xf32>
    tpu.vector_store %arg5[%c0_6, %c0_7, %c0_8, %c0_9, %c0_10, %c0_11], %9 {strides = array<i32>} : memref<1x4x2x2x8x8xf32, #tpu.memory_space<vmem>>, vector<1x4x1x1x8x8xf32>,
    %c1 = arith.constant 1 : index
    %c0_12 = arith.constant 0 : index
    %c0_13 = arith.constant 0 : index
    %10 = vector.load %arg3[%c1, %c0_12, %c0_13] : memref<2x16x8xf32, #tpu.memory_space<vmem>>, vector<1x16x8xf32>
    %11 = vector.shape_cast %10 : vector<1x16x8xf32> to vector<16x8xf32>
    %cst_14 = arith.constant dense<0.000000e+00> : vector<32x8xf32>
    %12 = tpu.matmul %2, %11, %cst_14 {dimension_numbers = #tpu.dot_dimension_numbers<[1], [0], [0], [1], [0, 0, 1, 1], [], []>, precision = #tpu.contract_precision<fp32>} : vector<32x16xf32>, vector<16x8xf32>, vector<32x8xf32> -> vector<32x8xf32>
    %13 = vector.shape_cast %12 : vector<32x8xf32> to vector<4x8x8xf32>
    %c0_15 = arith.constant 0 : index
    %c0_16 = arith.constant 0 : index
    %c0_17 = arith.constant 0 : index
    %c1_18 = arith.constant 1 : index
    %c0_19 = arith.constant 0 : index
    %c0_20 = arith.constant 0 : index
    %14 = vector.load %arg5[%c0_15, %c0_16, %c0_17, %c1_18, %c0_19, %c0_20] : memref<1x4x2x2x8x8xf32, #tpu.memory_space<vmem>>, vector<1x4x1x1x8x8xf32>
    %15 = vector.shape_cast %14 : vector<1x4x1x1x8x8xf32> to vector<4x8x8xf32>
    %16 = vector.shape_cast %13 : vector<4x8x8xf32> to vector<1x4x1x1x8x8xf32>
    tpu.vector_store %arg5[%c0_15, %c0_16, %c0_17, %c1_18, %c0_19, %c0_20], %16 {strides = array<i32>} : memref<1x4x2x2x8x8xf32, #tpu.memory_space<vmem>>, vector<1x4x1x1x8x8xf32>,
    %c0_21 = arith.constant 0 : index
    %c0_22 = arith.constant 0 : index
    %c1_23 = arith.constant 1 : index
    %c0_24 = arith.constant 0 : index
    %17 = tpu.strided_load %arg4[%c0_21, %c0_22, %c1_23, %c0_24] {strides = array<i32: 1, 1, 2, 1>} : memref<1x4x16x16xf32, #tpu.memory_space<vmem>>, vector<1x4x8x16xf32>
    %18 = vector.shape_cast %17 : vector<1x4x8x16xf32> to vector<4x8x16xf32>
    %19 = vector.shape_cast %18 : vector<4x8x16xf32> to vector<32x16xf32>
    %c0_25 = arith.constant 0 : index
    %c0_26 = arith.constant 0 : index
    %c0_27 = arith.constant 0 : index
    %20 = vector.load %arg3[%c0_25, %c0_26, %c0_27] : memref<2x16x8xf32, #tpu.memory_space<vmem>>, vector<1x16x8xf32>
    %21 = vector.shape_cast %20 : vector<1x16x8xf32> to vector<16x8xf32>
    %cst_28 = arith.constant dense<0.000000e+00> : vector<32x8xf32>
    %22 = tpu.matmul %19, %21, %cst_28 {dimension_numbers = #tpu.dot_dimension_numbers<[1], [0], [0], [1], [0, 0, 1, 1], [], []>, precision = #tpu.contract_precision<fp32>} : vector<32x16xf32>, vector<16x8xf32>, vector<32x8xf32> -> vector<32x8xf32>
    %23 = vector.shape_cast %22 : vector<32x8xf32> to vector<4x8x8xf32>
    %c0_29 = arith.constant 0 : index
    %c0_30 = arith.constant 0 : index
    %c1_31 = arith.constant 1 : index
    %c0_32 = arith.constant 0 : index
    %c0_33 = arith.constant 0 : index
    %c0_34 = arith.constant 0 : index
    %24 = vector.load %arg5[%c0_29, %c0_30, %c1_31, %c0_32, %c0_33, %c0_34] : memref<1x4x2x2x8x8xf32, #tpu.memory_space<vmem>>, vector<1x4x1x1x8x8xf32>
    %25 = vector.shape_cast %24 : vector<1x4x1x1x8x8xf32> to vector<4x8x8xf32>
    %26 = vector.shape_cast %23 : vector<4x8x8xf32> to vector<1x4x1x1x8x8xf32>
    tpu.vector_store %arg5[%c0_29, %c0_30, %c1_31, %c0_32, %c0_33, %c0_34], %26 {strides = array<i32>} : memref<1x4x2x2x8x8xf32, #tpu.memory_space<vmem>>, vector<1x4x1x1x8x8xf32>,
    %c1_35 = arith.constant 1 : index
    %c0_36 = arith.constant 0 : index
    %c0_37 = arith.constant 0 : index
    %27 = vector.load %arg3[%c1_35, %c0_36, %c0_37] : memref<2x16x8xf32, #tpu.memory_space<vmem>>, vector<1x16x8xf32>
    %28 = vector.shape_cast %27 : vector<1x16x8xf32> to vector<16x8xf32>
    %cst_38 = arith.constant dense<0.000000e+00> : vector<32x8xf32>
    %29 = tpu.matmul %19, %28, %cst_38 {dimension_numbers = #tpu.dot_dimension_numbers<[1], [0], [0], [1], [0, 0, 1, 1], [], []>, precision = #tpu.contract_precision<fp32>} : vector<32x16xf32>, vector<16x8xf32>, vector<32x8xf32> -> vector<32x8xf32>
    %30 = vector.shape_cast %29 : vector<32x8xf32> to vector<4x8x8xf32>
    %c0_39 = arith.constant 0 : index
    %c0_40 = arith.constant 0 : index
    %c1_41 = arith.constant 1 : index
    %c1_42 = arith.constant 1 : index
    %c0_43 = arith.constant 0 : index
    %c0_44 = arith.constant 0 : index
    %31 = vector.load %arg5[%c0_39, %c0_40, %c1_41, %c1_42, %c0_43, %c0_44] : memref<1x4x2x2x8x8xf32, #tpu.memory_space<vmem>>, vector<1x4x1x1x8x8xf32>
    %32 = vector.shape_cast %31 : vector<1x4x1x1x8x8xf32> to vector<4x8x8xf32>
    %33 = vector.shape_cast %30 : vector<4x8x8xf32> to vector<1x4x1x1x8x8xf32>
    tpu.vector_store %arg5[%c0_39, %c0_40, %c1_41, %c1_42, %c0_43, %c0_44], %33 {strides = array<i32>} : memref<1x4x2x2x8x8xf32, #tpu.memory_space<vmem>>, vector<1x4x1x1x8x8xf32>,
    return
  }
  func.func @transform_0(%arg0: i32, %arg1: i32, %arg2: i32) -> (i32, i32, i32) {
    %c0_i32 = arith.constant 0 : i32
    %c0_i32_0 = arith.constant 0 : i32
    %c0_i32_1 = arith.constant 0 : i32
    %c0_i32_2 = arith.constant 0 : i32
    return %c0_i32, %c0_i32_0, %c0_i32_1 : i32, i32, i32
  }
  func.func @transform_1(%arg0: i32, %arg1: i32, %arg2: i32) -> (i32, i32, i32, i32) {
    %c0_i32 = arith.constant 0 : i32
    %c0_i32_0 = arith.constant 0 : i32
    return %arg0, %arg1, %arg2, %c0_i32 : i32, i32, i32, i32
  }
  func.func @transform_2(%arg0: i32, %arg1: i32, %arg2: i32) -> (i32, i32, i32, i32, i32, i32) {
    %c0_i32 = arith.constant 0 : i32
    %c0_i32_0 = arith.constant 0 : i32
    %c0_i32_1 = arith.constant 0 : i32
    %c0_i32_2 = arith.constant 0 : i32
    return %arg0, %arg1, %c0_i32, %c0_i32_0, %arg2, %c0_i32_1 : i32, i32, i32, i32, i32, i32
  }
}

</mosaic_0001>

<bundles_post_ra>
// kernel: tpu_custom_call.1
= control target key start
LH: loop header
LB: loop body
LE: loop exit
PB: predicated region body
PF: predicated region fallthrough
CT: control target
= control target key end

     0   :  { %7 = vsyncpa [#allocation3], 0  ;;  %s2062_s0 = inlined_call_operand.vmem [shape: f32[2,16,8], index: 0, kind: input, shape index: {}]   ;;  %s2063_s1 = inlined_call_operand.hbm [shape: f32[2,4,16,16], index: 1, kind: input, shape index: {}]   ;;  %s2064_s2 = inlined_call_operand.hbm [shape: f32[2,4,2,2,8,8], index: 2, kind: output, shape index: {}]  }
   0x1   :  { %9 = vsyncpa [#allocation3 + $0x1], 0 }
   0x2   :  { %10 = vsyncpa [#allocation4], 0 }
   0x3   :  { %12 = vsyncpa [#allocation4 + $0x1], 0  ;;  %s1628_s9 = smov 0   ;;  %s1630_s10 = smov 0  }
   0x4   :  { %s1632_s11 = smov 0   ;;  %s1634_s12 = smov 0  }
   0x5   :  { %s1636_s13 = smov 0   ;;  %s1638_s14 = smov 0  }
   0x6 LB: > { %s1389_s15 = sadd.s32 4294967295, %s1607_s14   ;;  %s1390_s16 = sadd.s32 4294967294, %s1607_s14   ;;  %s1607_s14 = sphi %s1638_s14, %s18_s14   ;;  %s1603_s13 = sphi %s1636_s13, %s2073_s13   ;;  %s1599_s12 = sphi %s1634_s12, %s2072_s12   ;;  %s1595_s11 = sphi %s1632_s11, %s2071_s11   ;;  %s1591_s10 = sphi %s1630_s10, %s2070_s10   ;;  %s1587_s9 = sphi %s1628_s9, %s2069_s9  }
   0x7   : > { %s37_s17 = sadd.s32 1, %s1603_s13  ;;  %s69_s18 = sadd.s32 1, %s1595_s11 }
   0x8   : > { %p39_p0 = scmp.ge.s32.totalorder %s37_s17, 2  ;;  %p76_p1 = scmp.ne.s32.totalorder %s1595_s11, %s1591_s10 }
   0x9   : > { %p77_p2 = scmp.eq.s32.totalorder %s1607_s14, 0  ;;  %p82_p3 = scmp.ne.s32.totalorder %s1591_s10, %s1587_s9 }
   0xa   : > { %s2075_s17 = smov (%p39_p0, %s37_s17), 0  ;;  %p83_p5 = scmp.eq.s32.totalorder %s1389_s15, 0 }
   0xb   : > { %p1669_p4 = por %p77_p2, %p76_p1  ;;  %s62_s20 = ssub.s32 %s1603_s13, %s2075_s17 }
   0xc   : > { %p110_p6 = scmp.eq.s32.totalorder %s1389_s15, 1  ;;  %p67_p7 = scmp.eq.s32.totalorder %s62_s20, 0 }
   0xd   : > { %p1675_p8 = por %p83_p5, %p82_p3  ;;  %p116_p10 = scmp.eq.s32.totalorder %s1390_s16, 1 }
   0xe   : > { %p1679_p9 = por %p110_p6, %p76_p1  ;;  %p1392_p12 = scmp.ge.s32.totalorder %s1607_s14, 2 }
   0xf   : > { %s1684_s23 = scalar_select %p67_p7, %s1595_s11, %s69_s18  }
  0x10   : > { %p1686_p11 = por %p116_p10, %p82_p3  ;;  %p1441_p13 = scmp.lt.s32.totalorder %s1607_s14, 2 }
  0x11   : > { %s139_s25 = sand.u32 1, %s1595_s11   ;;  %s1427_s27 = sshll.u32 %s1603_s13, 6 }
  0x12   : > { %s1393_s26 = sshll.u32 %s139_s25, 6  ;;  %s153_s30 = scalar_lea.hbm %s2063_s1, %s1427_s27 }
  0x13   : > { %s143_s3 = scalar_lea.vmem [#allocation2], %s1393_s26  ;;  %s154_s5 = sshll.u32 %s153_s30, 4  ;;  %s155_s5 = int_to_ptr.hbm [resolvable:$true] %s154_s5 }
  0x14   : > { %s156_s4 = sshll.u32 %s143_s3, 4  ;;  %p1434_p0 = pnand %p1441_p13, %p1669_p4  ;;  %s157_s4 = int_to_ptr.vmem [resolvable:$true] %s156_s4 }
  0x15   : > { %p1396_p1 = scmp.ge.s32.totalorder %s1607_s14, 1  ;;  %s140_s6 = scalar_lea.sflag [#allocation3], %s139_s25 }
  0x16   : > { %s1609_s7 = smov 128   ;;  %s1610_s8 = smov 8  }
  0x17   : > { %1436 = dma.hbm_to_vmem [thread:$0]  (!%p1434_p0), %s155_s5, 1024, %s157_s4, %s140_s6, %s1609_s7, %s1609_s7, %s1610_s8  }
  0x18   : > { %p164_p2 = scmp.lt.s32.totalorder %s1607_s14, 3 }
  0x1a   : > { %p165_p3 = pnand %p1396_p1, %p164_p2 }
  0x1b   : > { %s1702_s15 = sand.u32 (!%p165_p3), 1, %s1591_s10  }
  0x1c   : > { %168 = sbr.rel (%p165_p3) target bundleno = 369 (0x171), region = 28  ;;  %s1397_s16 = sshll.u32 (!%p165_p3), %s1702_s15, 6 }
  0x1d   : > { %s171_s18 = scalar_lea.sflag (!%p165_p3), [#allocation3], %s1702_s15  ;;  %s1706_s20 = scalar_lea.vmem (!%p165_p3), [#allocation2], %s1397_s16 }
  0x21   : > { %1578 = dma.done.wait (%p1675_p8), %s171_s18, 1024  }
  0x22   : > { %1580 = vsyncadd (%p1675_p8), %s171_s18, 4294966272  ;;  %vm208_vm0 = vcmask 130048   ;;  %v207_v0 = vld [vmem:[%s2062_s0 + $0x8] sm:$0xff]  ;;  %v206_v1 = vld [vmem:[%s2062_s0] sm:$0xff]  ;;  %s1398_s3 = sshll.u32 %s1702_s15, 7  ;;  %vm473_vm1 = vcmask 64512  }
  0x23   : > { %v199_v2 = vld [vmem:[%s1706_s20] ss:$2 sm:$0xff]  ;;  %v1719_v3 = vand.u32 4294901760, %v207_v0  ;;  %v1721_v4 = vand.u32 4294901760, %v206_v1  ;;  %v1403_v6 = vld [vmem:[%s2062_s0 + $0x18] sm:$0xff]  ;;  %v1402_v12 = vld [vmem:[%s2062_s0 + $0x10] sm:$0xff] }
  0x24   : > { %v210_v5 = vsel %vm208_vm0, %v199_v2, 0  ;;  %v1399_v7 = vld [vmem:[%s1706_s20 + $0x10] ss:$2 sm:$0xff]  ;;  %v1730_v9 = vand.u32 4294901760, %v1403_v6  ;;  %v1400_v11 = vld [vmem:[%s1706_s20 + $0x20] ss:$2 sm:$0xff] }
  0x25   : > { %v1728_v8 = vand.u32 4294901760, %v210_v5  ;;  %v213_v10 = vsel %vm208_vm0, %v1399_v7, 0  ;;  %v1738_v13 = vsub.f32 %v207_v0, %v1719_v3  ;;  %371 = vmatpush.msra.mxu3 %v1719_v3  ;;  %236 = vmatpush.msra.mxu0 %v1719_v3  ;;  %v1743_v14 = vsub.f32 %v206_v1, %v1721_v4  ;;  %v1401_v38 = vld [vmem:[%s1706_s20 + $0x30] ss:$2 sm:$0xff]  ;;  %v1408_v52 = vld [vmem:[%s1706_s20 + $0x1] ss:$2 sm:$0xff] }
  0x26   : > { %v1745_v15 = vand.u32 4294901760, %v213_v10  ;;  %v1751_v17 = vsub.f32 %v1403_v6, %v1730_v9  ;;  %v216_v18 = vsel %vm208_vm0, %v1400_v11, 0  ;;  %v1754_v19 = vand.u32 4294901760, %v1402_v12  ;;  %v1409_v55 = vld [vmem:[%s1706_s20 + $0x11] ss:$2 sm:$0xff]  ;;  %s1976_s4 = scalar_lea.vmem [#allocation5], %s1398_s3 }
  0x27   : > { %v1748_v16 = vsub.f32 %v210_v5, %v1728_v8  ;;  %331 = vmatpush.msra.mxu2 %v1738_v13  ;;  %373 = vmatpush.msra.mxu3 %v1721_v4  ;;  %v1759_v20 = vand.u32 4294901760, %v1738_v13  ;;  %v1762_v21 = vand.u32 4294901760, %v1743_v14  ;;  %v1783_v28 = vand.u32 4294901760, %v216_v18  ;;  %v1410_v60 = vld [vmem:[%s1706_s20 + $0x21] ss:$2 sm:$0xff]  ;;  %s1428_s5 = sshll.u32 %s1599_s12, 7 }
  0x28   : > { %v1765_v22 = vsub.f32 %v213_v10, %v1745_v15  ;;  %238 = vmatpush.msra.mxu0 %v1721_v4  ;;  %v1772_v24 = vand.u32 4294901760, %v1751_v17  ;;  %v1775_v25 = vsub.f32 %v1402_v12, %v1754_v19  ;;  %v219_v42 = vsel %vm208_vm0, %v1401_v38, 0  ;;  %s1292_s8 = scalar_lea.hbm %s2064_s2, %s1428_s5  ;;  %s1293_s16 = sshll.u32 %s1976_s4, 4  ;;  %s1294_s16 = int_to_ptr.vmem [resolvable:$true] %s1293_s16 }
  0x29   : > { %v1768_v23 = vand.u32 4294901760, %v1748_v16  ;;  %334 = vmatpush.msra.mxu2 %v1743_v14  ;;  %v289_v26 = vsub.f32 %v1738_v13, %v1759_v20  ;;  %v295_v27 = vsub.f32 %v1743_v14, %v1762_v21  ;;  %v1809_v40 = vsub.f32 %v216_v18, %v1783_v28  ;;  %s1295_s18 = sshll.u32 %s1292_s8, 4  ;;  %s1277_s12 = scalar_lea.sflag [#allocation4], %s1702_s15  ;;  %s1296_s18 = int_to_ptr.hbm [resolvable:$true] %s1295_s18 }
  0x2a   : > { %416 = vmatpush.msrb.mxu0 %v1759_v20  ;;  %337 = vmatmul.f32.vlgmr.msra.gmra.mxu2 %v1748_v16  ;;  %v549_v30 = vsub.f32 %v1751_v17, %v1772_v24  ;;  %v1792_v31 = vand.u32 4294901760, %v1765_v22  ;;  %v1795_v32 = vand.u32 4294901760, %v1775_v25  ;;  %v1824_v45 = vand.u32 4294901760, %v219_v42  ;;  %s1545_s27 = scalar_lea.hbm %s2064_s2, 256 }
  0x2b   : > { %377 = vmatmul.f32.vlgmr.msra.gmra.mxu3 %v1768_v23  ;;  %v242_v29 = vsub.f32 %v1748_v16, %v1768_v23  ;;  %496 = vmatpush.msrb.mxu2 %v1730_v9  ;;  %v290_v33 = vand.u32 4294901760, %v289_v26  ;;  %v296_v34 = vand.u32 4294901760, %v295_v27  ;;  %v1822_v44 = vand.u32 4294901760, %v1809_v40 }
  0x2c   : > { %420 = vmatpush.msrb.mxu0 %v1762_v21  ;;  %v1799_v36 = vand.u32 4294901760, %v549_v30  ;;  %v555_v37 = vsub.f32 %v1775_v25, %v1795_v32  ;;  %v250_v39 = vsub.f32 %v1765_v22, %v1792_v31  ;;  %v1835_v47 = vsub.f32 %v219_v42, %v1824_v45 }
  0x2d   : > { %v243_v35 = vand.u32 4294901760, %v242_v29  ;;  %291 = vmatpush.msra.mxu1 %v290_v33  ;;  %498 = vmatpush.msrb.mxu2 %v1754_v19  ;;  %v258_v46 = vsub.f32 %v1809_v40, %v1822_v44  ;;  %v749_v53 = vsel %vm208_vm0, %v1408_v52, 0  ;;  %v752_v57 = vsel %vm208_vm0, %v1409_v55, 0 }
  0x2e   : > { %551 = vmatpush.msrb.mxu3 %v1799_v36  ;;  %v1811_v41 = vand.u32 4294901760, %v555_v37  ;;  %v251_v43 = vand.u32 4294901760, %v250_v39  ;;  %v1842_v49 = vand.u32 4294901760, %v1835_v47  ;;  %v1888_v54 = vand.u32 4294901760, %v749_v53 }
  0x2f   : > { %244 = vmatmul.f32.vlgmr.msra.gmra.mxu0 %v243_v35  ;;  %297 = vmatpush.msra.mxu1 %v296_v34  ;;  %v259_v48 = vand.u32 4294901760, %v258_v46  ;;  %v1902_v59 = vand.u32 4294901760, %v752_v57  ;;  %v755_v63 = vsel %vm208_vm0, %v1410_v60, 0 }
  0x30   : > { %676 = vmatpush.msra.mxu2 %v1772_v24  ;;  %299 = vmatmul.f32.vlgmr.msra.gmra.mxu1 %v1728_v8  ;;  %v266_v50 = vsub.f32 %v1835_v47, %v1842_v49  ;;  %v1893_v56 = vsub.f32 %v749_v53, %v1888_v54  ;;  %v1918_v2 = vand.u32 4294901760, %v755_v63 }
  0x31   : > { %557 = vmatpush.msrb.mxu3 %v1811_v41  ;;  %453 = vmatpush.msrb.mxu1 %v1719_v3  ;;  %v1909_v62 = vsub.f32 %v752_v57, %v1902_v59 }
  0x32   : > { %591 = vmatpush.msra.mxu0 %v1751_v17  ;;  %342 = vmatmul.f32.gmra.mxu2 %v1765_v22  ;;  %v267_v51 = vand.u32 4294901760, %v266_v50  ;;  %v1900_v58 = vand.u32 4294901760, %v1893_v56  ;;  %v1928_v5 = vsub.f32 %v755_v63, %v1918_v2 }
  0x33   : > { %383 = vmatmul.f32.gmra.mxu3 %v1792_v31  ;;  %455 = vmatpush.msrb.mxu1 %v1721_v4  ;;  %v1916_v1 = vand.u32 4294901760, %v1909_v62 }
  0x34   : > { %713 = vmatpush.msra.mxu3 %v1730_v9  ;;  %680 = vmatpush.msra.mxu2 %v1795_v32  ;;  %v781_v61 = vsub.f32 %v1893_v56, %v1900_v58 }
  0x35   : > { %631 = vmatpush.msra.mxu1 %v1730_v9  ;;  %594 = vmatpush.msra.mxu0 %v1775_v25 }
  0x36   : > { %715 = vmatpush.msra.mxu3 %v1754_v19  ;;  %v782_v0 = vand.u32 4294901760, %v781_v61 }
  0x37   : > { %252 = vmatmul.f32.gmra.mxu0 %v251_v43  ;;  %633 = vmatpush.msra.mxu1 %v1754_v19 }
  0x38   : > { %303 = vmatmul.f32.gmra.mxu1 %v1745_v15 }
  0x3a   : > { %347 = vmatmul.f32.gmra.mxu2 %v1809_v40 }
  0x3b   : > { %389 = vmatmul.f32.gmra.mxu3 %v1822_v44 }
  0x3f   : > { %260 = vmatmul.f32.gmra.mxu0 %v259_v48 }
  0x40   : > { %307 = vmatmul.f32.gmra.mxu1 %v1783_v28 }
  0x42   : > { %352 = vmatmul.f32.gmra.mxu2 %v1835_v47 }
  0x43   : > { %395 = vmatmul.f32.gmra.mxu3 %v1842_v49 }
  0x47   : > { %268 = vmatmul.f32.gmra.mxu0 %v267_v51 }
  0x48   : > { %311 = vmatmul.f32.gmra.mxu1 %v1824_v45 }
  0x4a   : > { %504 = vmatmul.f32.vlgmr.msrb.gmra.mxu2 %v243_v35 }
  0x4b   : > { %559 = vmatmul.f32.vlgmr.msrb.gmra.mxu3 %v1728_v8  ;;  %870 = vmatpush.msrb.mxu2 %v1738_v13 }
  0x4c   : > { %910 = vmatpush.msrb.mxu3 %v1719_v3 }
  0x4d   : > { %873 = vmatpush.msrb.mxu2 %v1743_v14 }
  0x4e   : > { %912 = vmatpush.msrb.mxu3 %v1721_v4 }
  0x4f   : > { %422 = vmatmul.f32.vlgmr.msrb.gmra.mxu0 %v1728_v8 }
  0x50   : > { %775 = vmatpush.msrb.mxu0 %v1719_v3  ;;  %457 = vmatmul.f32.vlgmr.msrb.gmra.mxu1 %v1728_v8 }
  0x51   : > { %830 = vmatpush.msrb.mxu1 %v290_v33 }
  0x52   : > { %777 = vmatpush.msrb.mxu0 %v1721_v4  ;;  %512 = vmatmul.f32.gmra.mxu2 %v251_v43 }
  0x53   : > { %563 = vmatmul.f32.gmra.mxu3 %v1745_v15  ;;  %836 = vmatpush.msrb.mxu1 %v296_v34 }
  0x57   : > { %426 = vmatmul.f32.gmra.mxu0 %v1745_v15 }
  0x58   : > { %461 = vmatmul.f32.gmra.mxu1 %v1745_v15 }
  0x5a   : > { %520 = vmatmul.f32.gmra.mxu2 %v259_v48 }
  0x5b   : > { %567 = vmatmul.f32.gmra.mxu3 %v1783_v28 }
  0x5f   : > { %430 = vmatmul.f32.gmra.mxu0 %v1783_v28 }
  0x60   : > { %465 = vmatmul.f32.gmra.mxu1 %v1783_v28 }
  0x62   : > { %528 = vmatmul.f32.gmra.mxu2 %v267_v51 }
  0x63   : > { %571 = vmatmul.f32.gmra.mxu3 %v1824_v45 }
  0x67   : > { %434 = vmatmul.f32.gmra.mxu0 %v1824_v45 }
  0x68   : > { %469 = vmatmul.f32.gmra.mxu1 %v1824_v45 }
  0x6a   : > { %682 = vmatmul.f32.vlgmr.msra.gmra.mxu2 %v1728_v8 }
  0x6b   : > { %717 = vmatmul.f32.vlgmr.msra.gmra.mxu3 %v1728_v8  ;;  %1034 = vmatpush.msra.mxu2 %v1730_v9  ;;  %v1938_v8 = vand.u32 4294901760, %v1928_v5 }
  0x6c   : > { %1089 = vmatpush.msra.mxu3 %v1799_v36 }
  0x6d   : > { %1036 = vmatpush.msra.mxu2 %v1754_v19  ;;  %v797_v11 = vsub.f32 %v1928_v5, %v1938_v8 }
  0x6e   : > { %1095 = vmatpush.msra.mxu3 %v1811_v41 }
  0x6f   : > { %597 = vmatmul.f32.vlgmr.msra.gmra.mxu0 %v1748_v16  ;;  %v798_v12 = vand.u32 4294901760, %v797_v11 }
  0x70   : > { %955 = vmatpush.msra.mxu0 %v1759_v20  ;;  %637 = vmatmul.f32.vlgmr.msra.gmra.mxu1 %v1768_v23 }
  0x71   : > { %992 = vmatpush.msra.mxu1 %v1719_v3  ;;  %v1411_v3 = vld [vmem:[%s1706_s20 + $0x31] ss:$2 sm:$0xff]  ;;  %s1539_s20 = sshra.s32 %s1296_s18, 4  ;;  %s1540_s20 = int_to_ptr.hbm [resolvable:$true] %s1539_s20 }
  0x72   : > { %959 = vmatpush.msra.mxu0 %v1762_v21  ;;  %686 = vmatmul.f32.gmra.mxu2 %v1745_v15  ;;  %v758_v6 = vsel %vm208_vm0, %v1411_v3, 0  ;;  %s1541_s19 = scalar_lea.hbm %s1540_s20, 128  ;;  %p1546_p7 = scmp.lt.s32.totalorder %s1540_s20, %s2064_s2 }
  0x73   : > { %721 = vmatmul.f32.gmra.mxu3 %v1745_v15  ;;  %994 = vmatpush.msra.mxu1 %v1721_v4  ;;  %v789_v4 = vsub.f32 %v1909_v62, %v1916_v1  ;;  %v1940_v10 = vand.u32 4294901760, %v758_v6  ;;  %p1542_p4 = scmp.ne.s32.totalorder %s1540_s20, %s1541_s19  ;;  %p1547_p8 = scmp.lt.s32.totalorder %s1545_s27, %s1541_s19 }
  0x75   : > { %v790_v7 = vand.u32 4294901760, %v789_v4  ;;  %p1543_p5 = pnand %p1542_p4, %p1679_p9  ;;  %p1548_p10 = por %p1547_p8, %p1546_p7 }
  0x77   : > { %602 = vmatmul.f32.gmra.mxu0 %v1765_v22  ;;  %p1544_p6 = pneg %p1543_p5 }
  0x78   : > { %643 = vmatmul.f32.gmra.mxu1 %v1792_v31 }
  0x79   : > { %p1549_p13 = pnand %p1548_p10, %p1544_p6 }
  0x7a   : > { %690 = vmatmul.f32.gmra.mxu2 %v1783_v28 }
  0x7b   : > { %725 = vmatmul.f32.gmra.mxu3 %v1783_v28 }
  0x7f   : > { %607 = vmatmul.f32.gmra.mxu0 %v1809_v40 }
  0x80   : > { %649 = vmatmul.f32.gmra.mxu1 %v1822_v44 }
  0x82   : > { %694 = vmatmul.f32.gmra.mxu2 %v1824_v45 }
  0x83   : > { %729 = vmatmul.f32.gmra.mxu3 %v1824_v45 }
  0x87   : > { %612 = vmatmul.f32.gmra.mxu0 %v1835_v47 }
  0x88   : > { %655 = vmatmul.f32.gmra.mxu1 %v1842_v49 }
  0x8a   : > { %876 = vmatmul.f32.vlgmr.msrb.gmra.mxu2 %v1893_v56 }
  0x8b   : > { %916 = vmatmul.f32.vlgmr.msrb.gmra.mxu3 %v1900_v58  ;;  %1214 = vmatpush.msrb.mxu2 %v1772_v24 }
  0x8c   : > { %1251 = vmatpush.msrb.mxu3 %v1730_v9 }
  0x8d   : > { %1218 = vmatpush.msrb.mxu2 %v1795_v32 }
  0x8e   : > { %1253 = vmatpush.msrb.mxu3 %v1754_v19 }
  0x8f   : > { %783 = vmatmul.f32.vlgmr.msrb.gmra.mxu0 %v782_v0 }
  0x90   : > { %1129 = vmatpush.msrb.mxu0 %v1751_v17  ;;  %838 = vmatmul.f32.vlgmr.msrb.gmra.mxu1 %v1888_v54 }
  0x91   : > { %1169 = vmatpush.msrb.mxu1 %v1730_v9  ;;  %v1946_v9 = vsub.f32 %v758_v6, %v1940_v10 }
  0x92   : > { %1132 = vmatpush.msrb.mxu0 %v1775_v25  ;;  %881 = vmatmul.f32.gmra.mxu2 %v1909_v62 }
  0x93   : > { %922 = vmatmul.f32.gmra.mxu3 %v1916_v1  ;;  %1171 = vmatpush.msrb.mxu1 %v1754_v19  ;;  %v1952_v13 = vand.u32 4294901760, %v1946_v9 }
  0x95   : > { %v805_v14 = vsub.f32 %v1946_v9, %v1952_v13 }
  0x97   : > { %791 = vmatmul.f32.gmra.mxu0 %v790_v7  ;;  %v806_v15 = vand.u32 4294901760, %v805_v14 }
  0x98   : > { %842 = vmatmul.f32.gmra.mxu1 %v1902_v59 }
  0x9a   : > { %886 = vmatmul.f32.gmra.mxu2 %v1928_v5 }
  0x9b   : > { %928 = vmatmul.f32.gmra.mxu3 %v1938_v8 }
  0x9f   : > { %799 = vmatmul.f32.gmra.mxu0 %v798_v12 }
  0xa0   : > { %846 = vmatmul.f32.gmra.mxu1 %v1918_v2 }
  0xa2   : > { %891 = vmatmul.f32.gmra.mxu2 %v1946_v9 }
  0xa3   : > { %934 = vmatmul.f32.gmra.mxu3 %v1952_v13 }
  0xa7   : > { %807 = vmatmul.f32.gmra.mxu0 %v806_v15 }
  0xa8   : > { %850 = vmatmul.f32.gmra.mxu1 %v1940_v10 }
  0xaa   : > { %1042 = vmatmul.f32.vlgmr.msra.gmra.mxu2 %v782_v0 }
  0xab   : > { %1097 = vmatmul.f32.vlgmr.msra.gmra.mxu3 %v1888_v54 }
  0xac   : > { %v245_v16 = vpop.f32.mrf.mxu0 }
  0xad   : > { %v300_v17 = vpop.f32.mrf.mxu1  ;;  %v338_v18 = vpop.f32.mrf.mxu2 }
  0xae   : > { %v378_v19 = vpop.f32.mrf.mxu3  ;;  %v301_v28 = vadd.f32 %v300_v17, %v245_v16 }
  0xaf   : > { %961 = vmatmul.f32.vlgmr.msra.gmra.mxu0 %v1888_v54 }
  0xb0   : > { %996 = vmatmul.f32.vlgmr.msra.gmra.mxu1 %v1888_v54  ;;  %v339_v32 = vadd.f32 %v338_v18, %v301_v28 }
  0xb2   : > { %1050 = vmatmul.f32.gmra.mxu2 %v790_v7  ;;  %v379_v34 = vadd.f32 %v378_v19, %v339_v32 }
  0xb3   : > { %1101 = vmatmul.f32.gmra.mxu3 %v1902_v59 }
  0xb4   : > { %v253_v20 = vpop.f32.mrf.mxu0 }
  0xb5   : > { %v304_v21 = vpop.f32.mrf.mxu1  ;;  %v343_v22 = vpop.f32.mrf.mxu2 }
  0xb6   : > { %v384_v23 = vpop.f32.mrf.mxu3  ;;  %v305_v35 = vadd.f32 %v304_v21, %v253_v20 }
  0xb7   : > { %965 = vmatmul.f32.gmra.mxu0 %v1902_v59 }
  0xb8   : > { %1000 = vmatmul.f32.gmra.mxu1 %v1902_v59  ;;  %v344_v40 = vadd.f32 %v343_v22, %v305_v35 }
  0xba   : > { %1058 = vmatmul.f32.gmra.mxu2 %v798_v12  ;;  %v385_v43 = vadd.f32 %v384_v23, %v344_v40 }
  0xbb   : > { %1105 = vmatmul.f32.gmra.mxu3 %v1918_v2 }
  0xbc   : > { %v261_v24 = vpop.f32.mrf.mxu0 }
  0xbd   : > { %v308_v25 = vpop.f32.mrf.mxu1  ;;  %v348_v26 = vpop.f32.mrf.mxu2 }
  0xbe   : > { %v390_v27 = vpop.f32.mrf.mxu3  ;;  %v309_v44 = vadd.f32 %v308_v25, %v261_v24 }
  0xbf   : > { %969 = vmatmul.f32.gmra.mxu0 %v1918_v2 }
  0xc0   : > { %1004 = vmatmul.f32.gmra.mxu1 %v1918_v2  ;;  %v349_v49 = vadd.f32 %v348_v26, %v309_v44 }
  0xc2   : > { %1066 = vmatmul.f32.gmra.mxu2 %v806_v15  ;;  %v391_v52 = vadd.f32 %v390_v27, %v349_v49 }
  0xc3   : > { %1109 = vmatmul.f32.gmra.mxu3 %v1940_v10 }
  0xc4   : > { %v269_v29 = vpop.f32.mrf.mxu0 }
  0xc5   : > { %v312_v30 = vpop.f32.mrf.mxu1  ;;  %v353_v31 = vpop.f32.mrf.mxu2 }
  0xc6   : > { %v396_v33 = vpop.f32.mrf.mxu3  ;;  %v313_v53 = vadd.f32 %v312_v30, %v269_v29 }
  0xc7   : > { %973 = vmatmul.f32.gmra.mxu0 %v1940_v10 }
  0xc8   : > { %1008 = vmatmul.f32.gmra.mxu1 %v1940_v10 }
  0xca   : > { %1220 = vmatmul.f32.vlgmr.msrb.gmra.mxu2 %v1888_v54 }
  0xcb   : > { %1255 = vmatmul.f32.vlgmr.msrb.gmra.mxu3 %v1888_v54 }
  0xcc   : > { %v423_v36 = vpop.f32.mrf.mxu0 }
  0xcd   : > { %v424_v37 = vadd.f32 %v423_v36, %v379_v34  ;;  %v458_v38 = vpop.f32.mrf.mxu1  ;;  %v505_v39 = vpop.f32.mrf.mxu2 }
  0xce   : > { %v560_v42 = vpop.f32.mrf.mxu3 }
  0xcf   : > { %v459_v41 = vadd.f32 %v458_v38, %v424_v37  ;;  %1135 = vmatmul.f32.vlgmr.msrb.gmra.mxu0 %v1893_v56  ;;  %v561_v4 = vadd.f32 %v560_v42, %v505_v39 }
  0xd0   : > { %1175 = vmatmul.f32.vlgmr.msrb.gmra.mxu1 %v1900_v58  ;;  %v354_v58 = vadd.f32 %v353_v31, %v313_v53 }
  0xd1   : > { %474 = vst.msk [vmem:[%s1976_s4] sm:$0xff] %vm473_vm1, %v459_v41 }
  0xd2   : > { %1224 = vmatmul.f32.gmra.mxu2 %v1902_v59  ;;  %v397_v61 = vadd.f32 %v396_v33, %v354_v58 }
  0xd3   : > { %1259 = vmatmul.f32.gmra.mxu3 %v1902_v59 }
  0xd4   : > { %v427_v45 = vpop.f32.mrf.mxu0 }
  0xd5   : > { %v428_v46 = vadd.f32 %v427_v45, %v385_v43  ;;  %v462_v47 = vpop.f32.mrf.mxu1  ;;  %v513_v48 = vpop.f32.mrf.mxu2 }
  0xd6   : > { %v564_v51 = vpop.f32.mrf.mxu3 }
  0xd7   : > { %v463_v50 = vadd.f32 %v462_v47, %v428_v46  ;;  %1140 = vmatmul.f32.gmra.mxu0 %v1909_v62  ;;  %v565_v14 = vadd.f32 %v564_v51, %v513_v48 }
  0xd8   : > { %1181 = vmatmul.f32.gmra.mxu1 %v1916_v1 }
  0xd9   : > { %475 = vst.msk [vmem:[%s1976_s4 + $0x20] sm:$0xff] %vm473_vm1, %v463_v50 }
  0xda   : > { %1228 = vmatmul.f32.gmra.mxu2 %v1918_v2 }
  0xdb   : > { %1263 = vmatmul.f32.gmra.mxu3 %v1918_v2 }
  0xdc   : > { %v431_v54 = vpop.f32.mrf.mxu0 }
  0xdd   : > { %v432_v55 = vadd.f32 %v431_v54, %v391_v52  ;;  %v466_v56 = vpop.f32.mrf.mxu1  ;;  %v521_v57 = vpop.f32.mrf.mxu2 }
  0xde   : > { %v568_v60 = vpop.f32.mrf.mxu3 }
  0xdf   : > { %v467_v59 = vadd.f32 %v466_v56, %v432_v55  ;;  %1145 = vmatmul.f32.gmra.mxu0 %v1928_v5  ;;  %v569_v21 = vadd.f32 %v568_v60, %v521_v57 }
  0xe0   : > { %1187 = vmatmul.f32.gmra.mxu1 %v1938_v8 }
  0xe1   : > { %476 = vst.msk [vmem:[%s1976_s4 + $0x40] sm:$0xff] %vm473_vm1, %v467_v59 }
  0xe2   : > { %1232 = vmatmul.f32.gmra.mxu2 %v1940_v10 }
  0xe3   : > { %1267 = vmatmul.f32.gmra.mxu3 %v1940_v10 }
  0xe4   : > { %v435_v62 = vpop.f32.mrf.mxu0 }
  0xe5   : > { %v436_v63 = vadd.f32 %v435_v62, %v397_v61  ;;  %v470_v0 = vpop.f32.mrf.mxu1  ;;  %v529_v1 = vpop.f32.mrf.mxu2 }
  0xe6   : > { %v572_v3 = vpop.f32.mrf.mxu3 }
  0xe7   : > { %v471_v2 = vadd.f32 %v470_v0, %v436_v63  ;;  %1150 = vmatmul.f32.gmra.mxu0 %v1946_v9  ;;  %v573_v30 = vadd.f32 %v572_v3, %v529_v1 }
  0xe8   : > { %1193 = vmatmul.f32.gmra.mxu1 %v1952_v13 }
  0xe9   : > { %477 = vst.msk [vmem:[%s1976_s4 + $0x60] sm:$0xff] %vm473_vm1, %v471_v2 }
  0xec   : > { %v598_v5 = vpop.f32.mrf.mxu0 }
  0xed   : > { %v599_v6 = vadd.f32 %v598_v5, %v561_v4  ;;  %v638_v7 = vpop.f32.mrf.mxu1  ;;  %v683_v8 = vpop.f32.mrf.mxu2 }
  0xee   : > { %v718_v10 = vpop.f32.mrf.mxu3 }
  0xef   : > { %v639_v11 = vadd.f32 %v638_v7, %v599_v6 }
  0xf1   : > { %v684_v12 = vadd.f32 %v683_v8, %v639_v11 }
  0xf3   : > { %v719_v15 = vadd.f32 %v718_v10, %v684_v12 }
  0xf4   : > { %v603_v16 = vpop.f32.mrf.mxu0 }
  0xf5   : > { %1404 = vst.msk [vmem:[%s1976_s4 + $0x8] sm:$0xff] %vm473_vm1, %v719_v15  ;;  %v604_v9 = vadd.f32 %v603_v16, %v565_v14  ;;  %v644_v17 = vpop.f32.mrf.mxu1  ;;  %v687_v18 = vpop.f32.mrf.mxu2 }
  0xf6   : > { %v722_v13 = vpop.f32.mrf.mxu3 }
  0xf7   : > { %v645_v19 = vadd.f32 %v644_v17, %v604_v9 }
  0xf9   : > { %v688_v20 = vadd.f32 %v687_v18, %v645_v19 }
  0xfb   : > { %v723_v22 = vadd.f32 %v722_v13, %v688_v20 }
  0xfc   : > { %v608_v23 = vpop.f32.mrf.mxu0 }
  0xfd   : > { %1405 = vst.msk [vmem:[%s1976_s4 + $0x28] sm:$0xff] %vm473_vm1, %v723_v22  ;;  %v609_v24 = vadd.f32 %v608_v23, %v569_v21  ;;  %v650_v25 = vpop.f32.mrf.mxu1  ;;  %v691_v26 = vpop.f32.mrf.mxu2 }
  0xfe   : > { %v726_v28 = vpop.f32.mrf.mxu3 }
  0xff   : > { %v651_v27 = vadd.f32 %v650_v25, %v609_v24 }
 0x101   : > { %v692_v29 = vadd.f32 %v691_v26, %v651_v27 }
 0x103   : > { %v727_v31 = vadd.f32 %v726_v28, %v692_v29 }
 0x104   : > { %v613_v32 = vpop.f32.mrf.mxu0 }
 0x105   : > { %1406 = vst.msk [vmem:[%s1976_s4 + $0x48] sm:$0xff] %vm473_vm1, %v727_v31  ;;  %v614_v33 = vadd.f32 %v613_v32, %v573_v30  ;;  %v656_v34 = vpop.f32.mrf.mxu1  ;;  %v695_v35 = vpop.f32.mrf.mxu2 }
 0x106   : > { %v730_v37 = vpop.f32.mrf.mxu3 }
 0x107   : > { %v657_v36 = vadd.f32 %v656_v34, %v614_v33 }
 0x109   : > { %v696_v38 = vadd.f32 %v695_v35, %v657_v36 }
 0x10b   : > { %v731_v39 = vadd.f32 %v730_v37, %v696_v38 }
 0x10c   : > { %v784_v40 = vpop.f32.mrf.mxu0 }
 0x10d   : > { %1407 = vst.msk [vmem:[%s1976_s4 + $0x68] sm:$0xff] %vm473_vm1, %v731_v39  ;;  %v839_v41 = vpop.f32.mrf.mxu1  ;;  %v877_v42 = vpop.f32.mrf.mxu2 }
 0x10e   : > { %v917_v43 = vpop.f32.mrf.mxu3  ;;  %v840_v52 = vadd.f32 %v839_v41, %v784_v40 }
 0x110   : > { %v878_v56 = vadd.f32 %v877_v42, %v840_v52 }
 0x112   : > { %v918_v58 = vadd.f32 %v917_v43, %v878_v56 }
 0x114   : > { %v792_v44 = vpop.f32.mrf.mxu0 }
 0x115   : > { %v843_v45 = vpop.f32.mrf.mxu1  ;;  %v882_v46 = vpop.f32.mrf.mxu2 }
 0x116   : > { %v923_v47 = vpop.f32.mrf.mxu3  ;;  %v844_v59 = vadd.f32 %v843_v45, %v792_v44 }
 0x118   : > { %v883_v0 = vadd.f32 %v882_v46, %v844_v59 }
 0x11a   : > { %v924_v3 = vadd.f32 %v923_v47, %v883_v0 }
 0x11c   : > { %v800_v48 = vpop.f32.mrf.mxu0 }
 0x11d   : > { %v847_v49 = vpop.f32.mrf.mxu1  ;;  %v887_v50 = vpop.f32.mrf.mxu2 }
 0x11e   : > { %v929_v51 = vpop.f32.mrf.mxu3  ;;  %v848_v4 = vadd.f32 %v847_v49, %v800_v48 }
 0x120   : > { %v888_v11 = vadd.f32 %v887_v50, %v848_v4 }
 0x122   : > { %v930_v14 = vadd.f32 %v929_v51, %v888_v11 }
 0x124   : > { %v808_v53 = vpop.f32.mrf.mxu0 }
 0x125   : > { %v851_v54 = vpop.f32.mrf.mxu1  ;;  %v892_v55 = vpop.f32.mrf.mxu2 }
 0x126   : > { %v935_v57 = vpop.f32.mrf.mxu3  ;;  %v852_v15 = vadd.f32 %v851_v54, %v808_v53 }
 0x128   : > { %v893_v19 = vadd.f32 %v892_v55, %v852_v15 }
 0x12a   : > { %v936_v21 = vadd.f32 %v935_v57, %v893_v19 }
 0x12c   : > { %v962_v60 = vpop.f32.mrf.mxu0 }
 0x12d   : > { %v963_v61 = vadd.f32 %v962_v60, %v918_v58  ;;  %v997_v62 = vpop.f32.mrf.mxu1  ;;  %v1043_v63 = vpop.f32.mrf.mxu2 }
 0x12e   : > { %v1098_v2 = vpop.f32.mrf.mxu3 }
 0x12f   : > { %v998_v1 = vadd.f32 %v997_v62, %v963_v61  ;;  %v1099_v28 = vadd.f32 %v1098_v2, %v1043_v63 }
 0x131   : > { %1412 = vst.msk [vmem:[%s1976_s4 + $0x10] sm:$0xff] %vm473_vm1, %v998_v1 }
 0x134   : > { %v966_v5 = vpop.f32.mrf.mxu0 }
 0x135   : > { %v967_v6 = vadd.f32 %v966_v5, %v924_v3  ;;  %v1001_v7 = vpop.f32.mrf.mxu1  ;;  %v1051_v8 = vpop.f32.mrf.mxu2 }
 0x136   : > { %v1102_v12 = vpop.f32.mrf.mxu3 }
 0x137   : > { %v1002_v10 = vadd.f32 %v1001_v7, %v967_v6  ;;  %v1103_v36 = vadd.f32 %v1102_v12, %v1051_v8 }
 0x139   : > { %1413 = vst.msk [vmem:[%s1976_s4 + $0x30] sm:$0xff] %vm473_vm1, %v1002_v10 }
 0x13c   : > { %v970_v16 = vpop.f32.mrf.mxu0 }
 0x13d   : > { %v971_v9 = vadd.f32 %v970_v16, %v930_v14  ;;  %v1005_v17 = vpop.f32.mrf.mxu1  ;;  %v1059_v18 = vpop.f32.mrf.mxu2 }
 0x13e   : > { %v1106_v20 = vpop.f32.mrf.mxu3 }
 0x13f   : > { %v1006_v13 = vadd.f32 %v1005_v17, %v971_v9  ;;  %v1107_v45 = vadd.f32 %v1106_v20, %v1059_v18 }
 0x141   : > { %1414 = vst.msk [vmem:[%s1976_s4 + $0x50] sm:$0xff] %vm473_vm1, %v1006_v13 }
 0x144   : > { %v974_v22 = vpop.f32.mrf.mxu0 }
 0x145   : > { %v975_v23 = vadd.f32 %v974_v22, %v936_v21  ;;  %v1009_v24 = vpop.f32.mrf.mxu1  ;;  %v1067_v25 = vpop.f32.mrf.mxu2 }
 0x146   : > { %v1110_v27 = vpop.f32.mrf.mxu3 }
 0x147   : > { %v1010_v26 = vadd.f32 %v1009_v24, %v975_v23  ;;  %v1111_v54 = vadd.f32 %v1110_v27, %v1067_v25 }
 0x149   : > { %1415 = vst.msk [vmem:[%s1976_s4 + $0x70] sm:$0xff] %vm473_vm1, %v1010_v26 }
 0x14c   : > { %v1136_v29 = vpop.f32.mrf.mxu0 }
 0x14d   : > { %v1137_v30 = vadd.f32 %v1136_v29, %v1099_v28  ;;  %v1176_v31 = vpop.f32.mrf.mxu1  ;;  %v1221_v32 = vpop.f32.mrf.mxu2 }
 0x14e   : > { %v1256_v34 = vpop.f32.mrf.mxu3 }
 0x14f   : > { %v1177_v33 = vadd.f32 %v1176_v31, %v1137_v30 }
 0x151   : > { %v1222_v35 = vadd.f32 %v1221_v32, %v1177_v33 }
 0x153   : > { %v1257_v37 = vadd.f32 %v1256_v34, %v1222_v35 }
 0x154   : > { %v1141_v38 = vpop.f32.mrf.mxu0 }
 0x155   : > { %1418 = vst.msk [vmem:[%s1976_s4 + $0x18] sm:$0xff] %vm473_vm1, %v1257_v37  ;;  %v1142_v39 = vadd.f32 %v1141_v38, %v1103_v36  ;;  %v1182_v40 = vpop.f32.mrf.mxu1  ;;  %v1225_v41 = vpop.f32.mrf.mxu2 }
 0x156   : > { %v1260_v43 = vpop.f32.mrf.mxu3 }
 0x157   : > { %v1183_v42 = vadd.f32 %v1182_v40, %v1142_v39 }
 0x159   : > { %v1226_v44 = vadd.f32 %v1225_v41, %v1183_v42 }
 0x15b   : > { %v1261_v46 = vadd.f32 %v1260_v43, %v1226_v44 }
 0x15c   : > { %v1146_v47 = vpop.f32.mrf.mxu0 }
 0x15d   : > { %1419 = vst.msk [vmem:[%s1976_s4 + $0x38] sm:$0xff] %vm473_vm1, %v1261_v46  ;;  %v1147_v48 = vadd.f32 %v1146_v47, %v1107_v45  ;;  %v1188_v49 = vpop.f32.mrf.mxu1  ;;  %v1229_v50 = vpop.f32.mrf.mxu2 }
 0x15e   : > { %v1264_v52 = vpop.f32.mrf.mxu3 }
 0x15f   : > { %v1189_v51 = vadd.f32 %v1188_v49, %v1147_v48 }
 0x161   : > { %v1230_v53 = vadd.f32 %v1229_v50, %v1189_v51 }
 0x163   : > { %v1265_v55 = vadd.f32 %v1264_v52, %v1230_v53 }
 0x164   : > { %v1151_v56 = vpop.f32.mrf.mxu0 }
 0x165   : > { %1420 = vst.msk [vmem:[%s1976_s4 + $0x58] sm:$0xff] %vm473_vm1, %v1265_v55  ;;  %v1152_v57 = vadd.f32 %v1151_v56, %v1111_v54  ;;  %v1194_v58 = vpop.f32.mrf.mxu1  ;;  %v1233_v59 = vpop.f32.mrf.mxu2 }
 0x166   : > { %v1268_v61 = vpop.f32.mrf.mxu3 }
 0x167   : > { %v1195_v60 = vadd.f32 %v1194_v58, %v1152_v57 }
 0x169   : > { %v1234_v62 = vadd.f32 %v1233_v59, %v1195_v60 }
 0x16b   : > { %v1269_v63 = vadd.f32 %v1268_v61, %v1234_v62 }
 0x16d   : > { %1421 = vst.msk [vmem:[%s1976_s4 + $0x78] sm:$0xff] %vm473_vm1, %v1269_v63 }
 0x16e   : > { %1552 = shalt.err (!%p1549_p13)
}
 0x16f   : > { %s1611_s15 = smov 128   ;;  %s1612_s29 = smov 8  }
 0x170   : > { %1431 = dma.vmem_to_hbm [thread:$0]  (%p1679_p9), %s1294_s16, 2048, %s1296_s18, %s1277_s12, %s1611_s15, %s1611_s15, %s1612_s29  }
 0x171 PF: > { %s1310_s30 = sand.u32 1, %s1587_s9   ;;  %p1438_p0 = pnand %p1392_p12, %p1686_p11 }
 0x172   : > { %s1311_s3 = scalar_lea.sflag [#allocation4], %s1310_s30 }
 0x173   : > { %p1439_p1 = pneg %p1438_p0 }
 0x175   : > { %1582 = dma.done.wait (%p1439_p1), %s1311_s3, 2048  }
 0x176   : > { %1584 = vsyncadd (%p1439_p1), %s1311_s3, 4294965248  ;;  %s18_s14 = sadd.s32 1, %s1607_s14   ;;  %s2069_s9 = smov %s1591_s10 }
 0x177   : > { %p15_p2 = scmp.ge.s32.totalorder %s18_s14, 4   ;;  %s2070_s10 = smov %s1595_s11 }
 0x178   : > { %s2071_s11 = smov %s1684_s23  ;;  %s2072_s12 = smov %s1603_s13 }
 0x179   : > { %s2073_s13 = smov %s2075_s17  ;;  %17 = sbr.rel (!%p15_p2) target bundleno = 6 (0x6), region = 84 }
 0x17e   :  { %1317 = vsyncpa [#allocation3], 1 }
 0x17f   :  { %1319 = vsyncpa [#allocation3 + $0x1], 1 }
 0x180   :  { %1320 = vsyncpa [#allocation4], 1 }
 0x181   :  { %1322 = vsyncpa [#allocation4 + $0x1], 1 }

</bundles_post_ra>
